<compile_context>
chip_gen: v7x
topology: tpu7x:2x2x1
jax: 0.10.0
libtpu: 0.0.40
codegen_flags: <defaults>
</compile_context>

<pallas_src>
import jax
import jax.numpy as jnp
from jax import lax
from jax.experimental import pallas as pl
from jax.experimental.pallas import tpu as pltpu

INPUT_FEATURES = 100
HIDDEN_DIMS = [256, 128, 64]
NUM_STATES = 5                  # len(AttentionState)
HEAD_WIDTH = NUM_STATES + 3     # 5 softmax logits + focus + load + span = 8
SPAN_LANE = NUM_STATES + 2      # lane index of the attention_span head
BN_EPS = 1e-5


def _attention_kernel(
    x_ref,
    w1_ref, b1_ref,
    w2_ref, b2_ref,
    w3_ref, b3_ref,
    wh_ref, bh_ref,
    out_ref,
):
    # feature_network (BN already folded into the following weights/bias).
    # bf16 operands, f32 accumulation (MXU-native on all generations).
    h = x_ref[...].astype(jnp.bfloat16)
    h = jnp.maximum(
        jnp.dot(h, w1_ref[...], preferred_element_type=jnp.float32)
        + b1_ref[...], 0.0)
    h = jnp.maximum(
        jnp.dot(h.astype(jnp.bfloat16), w2_ref[...],
                preferred_element_type=jnp.float32) + b2_ref[...], 0.0)
    h = jnp.maximum(
        jnp.dot(h.astype(jnp.bfloat16), w3_ref[...],
                preferred_element_type=jnp.float32) + b3_ref[...], 0.0)

    # Fused heads: one (64, 8) matmul -> (tile_b, 8) raw pre-activations.
    raw = jnp.dot(h.astype(jnp.bfloat16), wh_ref[...],
                  preferred_element_type=jnp.float32) + bh_ref[...]

    # (1, 8) lane constants (one vreg each): softmax-lane mask + span scale.
    lane = lax.broadcasted_iota(jnp.int32, (1, HEAD_WIDTH), 1)
    is_sm = lane < NUM_STATES
    scale = jnp.where(lane == SPAN_LANE, 3600.0, 1.0).astype(jnp.float32)

    # Single exp pass shared by softmax (lanes < 5) and sigmoid (lanes >= 5):
    #   softmax lane:  t = exp(raw - m)  ->  t / sum(t)
    #   sigmoid lane:  t = exp(-raw)     ->  1 / (1 + t)
    logits = jnp.where(is_sm, raw, -jnp.inf)
    m = jnp.max(logits, axis=-1, keepdims=True)
    t = jnp.exp(jnp.where(is_sm, raw - m, -raw))
    denom = jnp.sum(jnp.where(is_sm, t, 0.0), axis=-1, keepdims=True)
    sm = t * pl.reciprocal(denom, approx=True)          # EUP slot
    sig = pl.reciprocal(1.0 + t, approx=True)           # EUP slot

    out_ref[...] = (jnp.where(is_sm, sm, sig) * scale).astype(out_ref.dtype)


def _fold_params(params, compute_dtype=jnp.bfloat16):
    """Fold eval-mode BatchNorm into the following layer and fuse the heads."""
    (w1, b1, s1, t1), (w2, b2, s2, t2), (w3, b3, s3, t3) = params["layers"]
    (wc, bc), (wf, bf), (wl, bl), (ws, bs) = params["heads"]

    # Fold BN_i (y = x*scale + shift) into layer i+1:
    #   (x*s + t) @ W + b == x @ (s^T * W) + (t @ W + b)
    w2f = s1.reshape(-1, 1) * w2
    b2f = t1 @ w2 + b2
    w3f = s2.reshape(-1, 1) * w3
    b3f = t2 @ w3 + b3

    # Fuse the 4 heads into one (64, 8) weight, fold BN3.
    wh = jnp.concatenate([wc, wf, wl, ws], axis=1)      # (64, 8)
    bh = jnp.concatenate([bc, bf, bl, bs], axis=1)      # (1, 8)
    whf = s3.reshape(-1, 1) * wh
    bhf = t3 @ wh + bh

    # Weights in bf16 (MXU operand dtype); biases stay f32 (added post-acc).
    return (w1.astype(compute_dtype), b1,
            w2f.astype(compute_dtype), b2f,
            w3f.astype(compute_dtype), b3f,
            whf.astype(compute_dtype), bhf)


def _round_up(n, m):
    return ((n + m - 1) // m) * m


def attention_tracking_forward(x, params, *, tile_b=None):
    """x: (B, INPUT_FEATURES) float. Returns dict of float32 outputs."""
    B, F = x.shape
    assert F == INPUT_FEATURES

    # Batch tiling:
    #   small B            -> one grid step covering the whole batch
    #   medium B (>256)    -> >= 2 parallel grid steps (v7x has 2 TCs/chip)
    #   large B            -> 1024-row tiles (amortize per-step overhead)
    if tile_b is None:
        if B <= 256:
            tile_b = B
        else:
            tile_b = min(1024, _round_up(pl.cdiv(B, 2), 8))
    grid = (pl.cdiv(B, tile_b),)

    folded = _fold_params(params)

    def const_spec(arr):
        # Weights/biases: full array, same block every grid step.
        return pl.BlockSpec(arr.shape, lambda i: (0,) * arr.ndim)

    in_specs = ([pl.BlockSpec((tile_b, INPUT_FEATURES), lambda i: (i, 0))]
                + [const_spec(a) for a in folded])

    out = pl.pallas_call(
        _attention_kernel,
        grid=grid,
        in_specs=in_specs,
        out_specs=pl.BlockSpec((tile_b, HEAD_WIDTH), lambda i: (i, 0)),
        out_shape=jax.ShapeDtypeStruct((B, HEAD_WIDTH), jnp.float32),
        compiler_params=pltpu.CompilerParams(
            dimension_semantics=("parallel",)),
    )(x, *folded)

    return {
        "attention_state": out[:, :NUM_STATES],
        "focus_score": out[:, NUM_STATES:NUM_STATES + 1],
        "cognitive_load": out[:, NUM_STATES + 1:NUM_STATES + 2],
        "attention_span": out[:, NUM_STATES + 2:NUM_STATES + 3],
    }


def init_params(key):
    """Deterministic synthetic parameters matching the PyTorch module shapes."""
    def linear(key, d_in, d_out):
        kw, kb = jax.random.split(key)
        bound = 1.0 / jnp.sqrt(d_in)
        w = jax.random.uniform(kw, (d_in, d_out), jnp.float32, -bound, bound)
        b = jax.random.uniform(kb, (1, d_out), jnp.float32, -bound, bound)
        return w, b

    keys = jax.random.split(key, 16)
    ki = iter(range(16))

    layers = []
    d_in = INPUT_FEATURES
    for d_out in HIDDEN_DIMS:
        w, b = linear(keys[next(ki)], d_in, d_out)
        # BatchNorm1d running stats + affine params (deterministic synthetic)
        k_bn = keys[next(ki)]
        kg, kb2, km, kv = jax.random.split(k_bn, 4)
        gamma = 1.0 + 0.1 * jax.random.normal(kg, (1, d_out), jnp.float32)
        beta = 0.1 * jax.random.normal(kb2, (1, d_out), jnp.float32)
        mean = 0.1 * jax.random.normal(km, (1, d_out), jnp.float32)
        var = jnp.abs(1.0 + 0.1 * jax.random.normal(kv, (1, d_out), jnp.float32))
        # fold BN into scale/shift: y = x*scale + shift
        scale = gamma / jnp.sqrt(var + BN_EPS)
        shift = beta - mean * scale
        layers.append((w, b, scale, shift))
        d_in = d_out

    heads = []
    for d_out in (NUM_STATES, 1, 1, 1):
        w, b = linear(keys[next(ki)], d_in, d_out)
        heads.append((w, b))

    return {"layers": layers, "heads": heads}


def reference_forward(x, params):
    """Plain-JAX f32 reference of the same (eval-mode) forward pass (un-folded)."""
    h = x.astype(jnp.float32)
    for (w, b, scale, shift) in params["layers"]:
        h = jnp.maximum(h @ w + b, 0.0) * scale + shift
    (wc, bc), (wf, bf), (wl, bl), (ws, bs) = params["heads"]
    probs = jax.nn.softmax(h @ wc + bc, axis=-1)
    focus = jax.nn.sigmoid(h @ wf + bf)
    load = jax.nn.sigmoid(h @ wl + bl)
    span = jax.nn.sigmoid(h @ ws + bs) * 3600.0
    return {"attention_state": probs, "focus_score": focus,
            "cognitive_load": load, "attention_span": span}


def _check(tag, out, ref, atol=2.5e-2, rtol=2.5e-2):
    # bf16 matmuls (f32 accumulation) + EUP approx reciprocals => ~1e-2 level
    # agreement with the exact f32 reference.
    for name in ("attention_state", "focus_score", "cognitive_load"):
        if not jnp.allclose(out[name], ref[name], atol=atol, rtol=rtol):
            raise AssertionError(f"{tag}: mismatch in {name}")
    # attention_span = sigmoid * 3600: compare on the sigmoid scale.
    if not jnp.allclose(out["attention_span"] / 3600.0,
                        ref["attention_span"] / 3600.0,
                        atol=atol, rtol=rtol):
        raise AssertionError(f"{tag}: mismatch in attention_span")


if __name__ == "__main__":
    key = jax.random.PRNGKey(0)
    k_params, k_x, k_x2 = jax.random.split(key, 3)

    params = init_params(k_params)

    # Small batch: single grid step covering the whole batch.
    x = jax.random.normal(k_x, (16, INPUT_FEATURES), jnp.float32)
    out = attention_tracking_forward(x, params)
    out = jax.tree_util.tree_map(jax.block_until_ready, out)
    _check("single-tile", out, reference_forward(x, params))

    # Ragged multi-tile path: B=20, tile_b=8 -> grid=(3,), masked last block.
    x2 = jax.random.normal(k_x2, (20, INPUT_FEATURES), jnp.float32)
    out2 = attention_tracking_forward(x2, params, tile_b=8)
    out2 = jax.tree_util.tree_map(jax.block_until_ready, out2)
    _check("ragged multi-tile", out2, reference_forward(x2, params))

    print("KERNEL_OK")
</pallas_src>

<mosaic_0001>
module attributes {stable_mosaic.version = 11 : i64} {
  func.func @_attention_kernel(%arg0: i32, %arg1: memref<16x100xf32, #tpu.memory_space<vmem>>, %arg2: memref<100x256xbf16, #tpu.memory_space<vmem>>, %arg3: memref<1x256xf32, #tpu.memory_space<vmem>>, %arg4: memref<256x128xbf16, #tpu.memory_space<vmem>>, %arg5: memref<1x128xf32, #tpu.memory_space<vmem>>, %arg6: memref<128x64xbf16, #tpu.memory_space<vmem>>, %arg7: memref<1x64xf32, #tpu.memory_space<vmem>>, %arg8: memref<64x8xbf16, #tpu.memory_space<vmem>>, %arg9: memref<1x8xf32, #tpu.memory_space<vmem>>, %arg10: memref<16x8xf32, #tpu.memory_space<vmem>>) attributes {dimension_semantics = [#tpu.dimension_semantics<parallel>], iteration_bounds = array<i64: 1>, scalar_prefetch = 0 : i64, scratch_operands = 0 : i64, tpu.core_type = #tpu.core_type<tc>, window_params = [{transform_indices = @transform_0, window_bounds = array<i64: 16, 100>}, {pipeline_mode = #tpu.pipeline_mode<synchronous>, transform_indices = @transform_1, window_bounds = array<i64: 100, 256>}, {pipeline_mode = #tpu.pipeline_mode<synchronous>, transform_indices = @transform_2, window_bounds = array<i64: 1, 256>}, {pipeline_mode = #tpu.pipeline_mode<synchronous>, transform_indices = @transform_3, window_bounds = array<i64: 256, 128>}, {pipeline_mode = #tpu.pipeline_mode<synchronous>, transform_indices = @transform_4, window_bounds = array<i64: 1, 128>}, {pipeline_mode = #tpu.pipeline_mode<synchronous>, transform_indices = @transform_5, window_bounds = array<i64: 128, 64>}, {pipeline_mode = #tpu.pipeline_mode<synchronous>, transform_indices = @transform_6, window_bounds = array<i64: 1, 64>}, {pipeline_mode = #tpu.pipeline_mode<synchronous>, transform_indices = @transform_7, window_bounds = array<i64: 64, 8>}, {pipeline_mode = #tpu.pipeline_mode<synchronous>, transform_indices = @transform_8, window_bounds = array<i64: 1, 8>}, {transform_indices = @transform_9, window_bounds = array<i64: 16, 8>}]} {
    %c0 = arith.constant 0 : index
    %c0_0 = arith.constant 0 : index
    %0 = vector.load %arg1[%c0, %c0_0] : memref<16x100xf32, #tpu.memory_space<vmem>>, vector<16x100xf32>
    %1 = arith.truncf %0 : vector<16x100xf32> to vector<16x100xbf16>
    %c0_1 = arith.constant 0 : index
    %c0_2 = arith.constant 0 : index
    %2 = vector.load %arg2[%c0_1, %c0_2] : memref<100x256xbf16, #tpu.memory_space<vmem>>, vector<100x256xbf16>
    %cst = arith.constant dense<0.000000e+00> : vector<16x256xf32>
    %3 = tpu.matmul %1, %2, %cst {dimension_numbers = #tpu.dot_dimension_numbers<[1], [0], [0], [1], [0, 0, 1, 1], [], []>} : vector<16x100xbf16>, vector<100x256xbf16>, vector<16x256xf32> -> vector<16x256xf32>
    %c0_3 = arith.constant 0 : index
    %c0_4 = arith.constant 0 : index
    %4 = vector.load %arg3[%c0_3, %c0_4] : memref<1x256xf32, #tpu.memory_space<vmem>>, vector<1x256xf32>
    %5 = vector.broadcast %4 : vector<1x256xf32> to vector<16x256xf32>
    %6 = arith.addf %3, %5 : vector<16x256xf32>
    %cst_5 = arith.constant 0.000000e+00 : f32
    %7 = vector.broadcast %cst_5 : f32 to vector<16x256xf32>
    %8 = arith.maximumf %6, %7 : vector<16x256xf32>
    %9 = arith.truncf %8 : vector<16x256xf32> to vector<16x256xbf16>
    %c0_6 = arith.constant 0 : index
    %c0_7 = arith.constant 0 : index
    %10 = vector.load %arg4[%c0_6, %c0_7] : memref<256x128xbf16, #tpu.memory_space<vmem>>, vector<256x128xbf16>
    %cst_8 = arith.constant dense<0.000000e+00> : vector<16x128xf32>
    %11 = tpu.matmul %9, %10, %cst_8 {dimension_numbers = #tpu.dot_dimension_numbers<[1], [0], [0], [1], [0, 0, 1, 1], [], []>} : vector<16x256xbf16>, vector<256x128xbf16>, vector<16x128xf32> -> vector<16x128xf32>
    %c0_9 = arith.constant 0 : index
    %c0_10 = arith.constant 0 : index
    %12 = vector.load %arg5[%c0_9, %c0_10] : memref<1x128xf32, #tpu.memory_space<vmem>>, vector<1x128xf32>
    %13 = vector.broadcast %12 : vector<1x128xf32> to vector<16x128xf32>
    %14 = arith.addf %11, %13 : vector<16x128xf32>
    %cst_11 = arith.constant 0.000000e+00 : f32
    %15 = vector.broadcast %cst_11 : f32 to vector<16x128xf32>
    %16 = arith.maximumf %14, %15 : vector<16x128xf32>
    %17 = arith.truncf %16 : vector<16x128xf32> to vector<16x128xbf16>
    %c0_12 = arith.constant 0 : index
    %c0_13 = arith.constant 0 : index
    %18 = vector.load %arg6[%c0_12, %c0_13] : memref<128x64xbf16, #tpu.memory_space<vmem>>, vector<128x64xbf16>
    %cst_14 = arith.constant dense<0.000000e+00> : vector<16x64xf32>
    %19 = tpu.matmul %17, %18, %cst_14 {dimension_numbers = #tpu.dot_dimension_numbers<[1], [0], [0], [1], [0, 0, 1, 1], [], []>} : vector<16x128xbf16>, vector<128x64xbf16>, vector<16x64xf32> -> vector<16x64xf32>
    %c0_15 = arith.constant 0 : index
    %c0_16 = arith.constant 0 : index
    %20 = vector.load %arg7[%c0_15, %c0_16] : memref<1x64xf32, #tpu.memory_space<vmem>>, vector<1x64xf32>
    %21 = vector.broadcast %20 : vector<1x64xf32> to vector<16x64xf32>
    %22 = arith.addf %19, %21 : vector<16x64xf32>
    %cst_17 = arith.constant 0.000000e+00 : f32
    %23 = vector.broadcast %cst_17 : f32 to vector<16x64xf32>
    %24 = arith.maximumf %22, %23 : vector<16x64xf32>
    %25 = arith.truncf %24 : vector<16x64xf32> to vector<16x64xbf16>
    %c0_18 = arith.constant 0 : index
    %c0_19 = arith.constant 0 : index
    %26 = vector.load %arg8[%c0_18, %c0_19] : memref<64x8xbf16, #tpu.memory_space<vmem>>, vector<64x8xbf16>
    %cst_20 = arith.constant dense<0.000000e+00> : vector<16x8xf32>
    %27 = tpu.matmul %25, %26, %cst_20 {dimension_numbers = #tpu.dot_dimension_numbers<[1], [0], [0], [1], [0, 0, 1, 1], [], []>} : vector<16x64xbf16>, vector<64x8xbf16>, vector<16x8xf32> -> vector<16x8xf32>
    %c0_21 = arith.constant 0 : index
    %c0_22 = arith.constant 0 : index
    %28 = vector.load %arg9[%c0_21, %c0_22] : memref<1x8xf32, #tpu.memory_space<vmem>>, vector<1x8xf32>
    %29 = vector.broadcast %28 : vector<1x8xf32> to vector<16x8xf32>
    %30 = arith.addf %27, %29 : vector<16x8xf32>
    %31 = tpu.iota {dimensions = array<i32: 1>} : vector<1x8xi32>
    %c5_i32 = arith.constant 5 : i32
    %32 = vector.broadcast %c5_i32 : i32 to vector<1x8xi32>
    %33 = arith.cmpi slt, %31, %32 : vector<1x8xi32>
    %c7_i32 = arith.constant 7 : i32
    %34 = vector.broadcast %c7_i32 : i32 to vector<1x8xi32>
    %35 = arith.cmpi eq, %31, %34 : vector<1x8xi32>
    %cst_23 = arith.constant 3.600000e+03 : f32
    %cst_24 = arith.constant 1.000000e+00 : f32
    %36 = vector.broadcast %cst_23 : f32 to vector<1x8xf32>
    %37 = vector.broadcast %cst_24 : f32 to vector<1x8xf32>
    %38 = arith.select %35, %36, %37 : vector<1x8xi1>, vector<1x8xf32>
    %cst_25 = arith.constant 0xFF800000 : f32
    %39 = vector.shape_cast %33 : vector<1x8xi1> to vector<1x8xi1>
    %40 = vector.broadcast %39 : vector<1x8xi1> to vector<16x8xi1>
    %41 = vector.broadcast %cst_25 : f32 to vector<16x8xf32>
    %42 = arith.select %40, %30, %41 : vector<16x8xi1>, vector<16x8xf32>
    %cst_26 = arith.constant dense<0xFF800000> : vector<16xf32>
    %43 = vector.multi_reduction <maximumf>, %42, %cst_26 [1] : vector<16x8xf32> to vector<16xf32>
    %44 = vector.shape_cast %43 : vector<16xf32> to vector<16x1xf32>
    %45 = vector.broadcast %44 : vector<16x1xf32> to vector<16x8xf32>
    %46 = arith.subf %30, %45 : vector<16x8xf32>
    %cst_27 = arith.constant 0.000000e+00 : f32
    %47 = vector.broadcast %cst_27 : f32 to vector<16x8xf32>
    %48 = arith.subf %47, %30 : vector<16x8xf32>
    %49 = vector.shape_cast %33 : vector<1x8xi1> to vector<1x8xi1>
    %50 = vector.broadcast %49 : vector<1x8xi1> to vector<16x8xi1>
    %51 = arith.select %50, %46, %48 : vector<16x8xi1>, vector<16x8xf32>
    %52 = math.exp %51 : vector<16x8xf32>
    %cst_28 = arith.constant 0.000000e+00 : f32
    %53 = vector.shape_cast %33 : vector<1x8xi1> to vector<1x8xi1>
    %54 = vector.broadcast %53 : vector<1x8xi1> to vector<16x8xi1>
    %55 = vector.broadcast %cst_28 : f32 to vector<16x8xf32>
    %56 = arith.select %54, %52, %55 : vector<16x8xi1>, vector<16x8xf32>
    %cst_29 = arith.constant dense<0.000000e+00> : vector<16xf32>
    %57 = vector.multi_reduction <add>, %56, %cst_29 [1] : vector<16x8xf32> to vector<16xf32>
    %58 = vector.shape_cast %57 : vector<16xf32> to vector<16x1xf32>
    %59 = tpu.reciprocal %58 {approx = true} : vector<16x1xf32> -> vector<16x1xf32>
    %60 = vector.broadcast %59 : vector<16x1xf32> to vector<16x8xf32>
    %61 = arith.mulf %52, %60 : vector<16x8xf32>
    %cst_30 = arith.constant 1.000000e+00 : f32
    %62 = vector.broadcast %cst_30 : f32 to vector<16x8xf32>
    %63 = arith.addf %62, %52 : vector<16x8xf32>
    %64 = tpu.reciprocal %63 {approx = true} : vector<16x8xf32> -> vector<16x8xf32>
    %65 = vector.shape_cast %33 : vector<1x8xi1> to vector<1x8xi1>
    %66 = vector.broadcast %65 : vector<1x8xi1> to vector<16x8xi1>
    %67 = arith.select %66, %61, %64 : vector<16x8xi1>, vector<16x8xf32>
    %68 = vector.broadcast %38 : vector<1x8xf32> to vector<16x8xf32>
    %69 = arith.mulf %67, %68 : vector<16x8xf32>
    %c0_31 = arith.constant 0 : index
    %c0_32 = arith.constant 0 : index
    %70 = vector.load %arg10[%c0_31, %c0_32] : memref<16x8xf32, #tpu.memory_space<vmem>>, vector<16x8xf32>
    tpu.vector_store %arg10[%c0_31, %c0_32], %69 {strides = array<i32>} : memref<16x8xf32, #tpu.memory_space<vmem>>, vector<16x8xf32>,
    return
  }
  func.func @transform_0(%arg0: i32) -> (i32, i32) {
    %c0_i32 = arith.constant 0 : i32
    %c0_i32_0 = arith.constant 0 : i32
    return %arg0, %c0_i32 : i32, i32
  }
  func.func @transform_1(%arg0: i32) -> (i32, i32) {
    %c0_i32 = arith.constant 0 : i32
    %c0_i32_0 = arith.constant 0 : i32
    %c0_i32_1 = arith.constant 0 : i32
    return %c0_i32, %c0_i32_0 : i32, i32
  }
  func.func @transform_2(%arg0: i32) -> (i32, i32) {
    %c0_i32 = arith.constant 0 : i32
    %c0_i32_0 = arith.constant 0 : i32
    %c0_i32_1 = arith.constant 0 : i32
    return %c0_i32, %c0_i32_0 : i32, i32
  }
  func.func @transform_3(%arg0: i32) -> (i32, i32) {
    %c0_i32 = arith.constant 0 : i32
    %c0_i32_0 = arith.constant 0 : i32
    %c0_i32_1 = arith.constant 0 : i32
    return %c0_i32, %c0_i32_0 : i32, i32
  }
  func.func @transform_4(%arg0: i32) -> (i32, i32) {
    %c0_i32 = arith.constant 0 : i32
    %c0_i32_0 = arith.constant 0 : i32
    %c0_i32_1 = arith.constant 0 : i32
    return %c0_i32, %c0_i32_0 : i32, i32
  }
  func.func @transform_5(%arg0: i32) -> (i32, i32) {
    %c0_i32 = arith.constant 0 : i32
    %c0_i32_0 = arith.constant 0 : i32
    %c0_i32_1 = arith.constant 0 : i32
    return %c0_i32, %c0_i32_0 : i32, i32
  }
  func.func @transform_6(%arg0: i32) -> (i32, i32) {
    %c0_i32 = arith.constant 0 : i32
    %c0_i32_0 = arith.constant 0 : i32
    %c0_i32_1 = arith.constant 0 : i32
    return %c0_i32, %c0_i32_0 : i32, i32
  }
  func.func @transform_7(%arg0: i32) -> (i32, i32) {
    %c0_i32 = arith.constant 0 : i32
    %c0_i32_0 = arith.constant 0 : i32
    %c0_i32_1 = arith.constant 0 : i32
    return %c0_i32, %c0_i32_0 : i32, i32
  }
  func.func @transform_8(%arg0: i32) -> (i32, i32) {
    %c0_i32 = arith.constant 0 : i32
    %c0_i32_0 = arith.constant 0 : i32
    %c0_i32_1 = arith.constant 0 : i32
    return %c0_i32, %c0_i32_0 : i32, i32
  }
  func.func @transform_9(%arg0: i32) -> (i32, i32) {
    %c0_i32 = arith.constant 0 : i32
    %c0_i32_0 = arith.constant 0 : i32
    return %arg0, %c0_i32 : i32, i32
  }
}

</mosaic_0001>

<bundles_post_ra>
// kernel: tpu_custom_call.1
= control target key start
LH: loop header
LB: loop body
LE: loop exit
PB: predicated region body
PF: predicated region fallthrough
CT: control target
= control target key end

     0   :  { %14 = vsyncpa [#allocation3], 0  ;;  %s1095_s0 = inlined_call_operand.hbm [shape: f32[16,100], index: 0, kind: input, shape index: {}]   ;;  %s1096_s1 = inlined_call_operand.hbm [shape: bf16[100,256], index: 1, kind: input, shape index: {}]   ;;  %s1097_s2 = inlined_call_operand.vmem [shape: f32[1,256], index: 2, kind: input, shape index: {}]   ;;  %s1098_s3 = inlined_call_operand.vmem [shape: bf16[256,128], index: 3, kind: input, shape index: {}]   ;;  %s1099_s4 = inlined_call_operand.vmem [shape: f32[1,128], index: 4, kind: input, shape index: {}]   ;;  %s1100_s5 = inlined_call_operand.vmem [shape: bf16[128,64], index: 5, kind: input, shape index: {}]   ;;  %s1101_s6 = inlined_call_operand.vmem [shape: f32[1,64], index: 6, kind: input, shape index: {}]   ;;  %s1102_s7 = inlined_call_operand.vmem [shape: bf16[64,8], index: 7, kind: input, shape index: {}]   ;;  %s1103_s8 = inlined_call_operand.vmem [shape: f32[1,8], index: 8, kind: input, shape index: {}]   ;;  %s1104_s9 = inlined_call_operand.vmem [shape: f32[16,8], index: 9, kind: output, shape index: {}]  }
   0x1   :  { %15 = vsyncpa [#allocation5], 0  ;;  %s878_s30 = smov [#allocation2]   ;;  %s830_s13 = scalar_lea.hbm %s1095_s0, 256 }
   0x2   :  { %s21_s10 = sshll.u32 %s878_s30, 4  ;;  %p831_p0 = scmp.ne.s32.totalorder %s1095_s0, %s830_s13  ;;  %s22_s10 = int_to_ptr.vmem [resolvable:$true] %s21_s10 }
   0x3   :  { %p834_p1 = scmp.lt.u32.totalorder %s830_s13, %s1095_s0 }
   0x5   :  { %p836_p2 = pnand %p834_p1, %p831_p0 }
   0x7   :  { %839 = shalt.err (!%p836_p2)
}
   0x8   :  { %s840_s18 = scalar_lea.vmem %s22_s10, 256  ;;  %p845_p4 = scmp.lt.s32.totalorder %s22_s10, %s22_s10 }
   0x9   :  { %p841_p3 = scmp.ne.s32.totalorder %s22_s10, %s840_s18  ;;  %p846_p5 = scmp.lt.s32.totalorder %s840_s18, %s840_s18 }
   0xb   :  { %p847_p6 = por %p846_p5, %p845_p4 }
   0xd   :  { %p848_p7 = pnand %p847_p6, %p841_p3 }
   0xf   :  { %851 = shalt.err (!%p848_p7)
}
  0x10   :  { %s879_s19 = smov 128   ;;  %s880_s20 = smov 8  }
  0x11   :  { %27 = dma.hbm_to_vmem [thread:$0]  %s1095_s0, 256, %s22_s10, [#allocation3], %s879_s19, %s879_s19, %s880_s20  }
  0x12   :  { %s881_s23 = smov [#allocation4]   ;;  %s852_s27 = scalar_lea.hbm %s1096_s1, 1664 }
  0x13   :  { %s33_s24 = sshll.u32 %s881_s23, 4  ;;  %p853_p8 = scmp.ne.s32.totalorder %s1096_s1, %s852_s27  ;;  %s34_s24 = int_to_ptr.vmem [resolvable:$true] %s33_s24 }
  0x14   :  { %p856_p9 = scmp.lt.u32.totalorder %s852_s27, %s1096_s1 }
  0x16   :  { %p858_p10 = pnand %p856_p9, %p853_p8 }
  0x18   :  { %861 = shalt.err (!%p858_p10)
}
  0x19   :  { %s862_s12 = scalar_lea.vmem %s34_s24, 1664  ;;  %p867_p12 = scmp.lt.s32.totalorder %s34_s24, %s34_s24 }
  0x1a   :  { %p863_p11 = scmp.ne.s32.totalorder %s34_s24, %s862_s12  ;;  %p868_p13 = scmp.lt.s32.totalorder %s862_s12, %s862_s12 }
  0x1c   :  { %p869_p0 = por %p868_p13, %p867_p12 }
  0x1e   :  { %p870_p1 = pnand %p869_p0, %p863_p11 }
  0x20   :  { %873 = shalt.err (!%p870_p1)
}
  0x21   :  { %39 = dma.hbm_to_vmem [thread:$0]  %s1096_s1, 1664, %s34_s24, [#allocation5], %s879_s19, %s879_s19, %s880_s20  }
  0x22   :  { %874 = dma.done.wait [#allocation3], 256  }
  0x23   :  { %875 = vsyncadd [#allocation3], 4294967040 }
  0x24   :  { %876 = dma.done.wait [#allocation5], 1664  }
  0x25   :  { %877 = vsyncadd [#allocation5], 4294965632  ;;  %v882_v0 = vmov 0   ;;  %v770_v1 = vld [vmem:[#allocation4 + $0x4] ss:$8 sps:$4 sm:$0xff]   ;;  %v790_v9 = vld [vmem:[%s1098_s3 + $0x40] sm:$0xff]   ;;  %v79_v42 = vlaneseq }
  0x26   :  { %197 = vmatprep.mubr.bf16.mxu0 %v882_v0  ;;  %v772_v2 = vld [vmem:[#allocation4] ss:$8 sps:$4 sm:$0xff]   ;;  %165 = vmatprep.subr.bf16.mxu0 %v770_v1  ;;  %v773_v3 = vld [vmem:[#allocation4 + $0x14] ss:$8 sps:$4 sm:$0xff]   ;;  %v775_v4 = vld [vmem:[#allocation4 + $0x10] ss:$8 sps:$4 sm:$0xff]  }
  0x27   :  { %166 = vmatpush1.bf16.msra.mxu0 %v772_v2  ;;  %v776_v5 = vld [vmem:[#allocation4 + $0x24] ss:$8 sps:$4 sm:$0xff]   ;;  %v778_v6 = vld [vmem:[#allocation4 + $0x20] ss:$8 sps:$4 sm:$0xff]   ;;  %v779_v7 = vld [vmem:[#allocation4 + $0x34] ss:$8 sps:$4 sm:$0xff]   ;;  %694 = vmatprep.subr.bf16.mxu1 %v790_v9 }
  0x28   :  { %167 = vmatprep.subr.bf16.mxu0 %v773_v3  ;;  %v781_v8 = vld [vmem:[#allocation4 + $0x30] ss:$8 sps:$4 sm:$0xff]   ;;  %v782_v10 = vld [vmem:[#allocation4 + $0x44] ss:$8 sps:$4 sm:$0xff]   ;;  %v784_v16 = vld [vmem:[#allocation4 + $0x40] ss:$8 sps:$4 sm:$0xff]  }
  0x29   :  { %v791_v11 = vld [vmem:[%s1098_s3] sm:$0xff]   ;;  %v76_v12 = vld [vmem:[#allocation4 + $0x60] sm:$0x33]  ;;  %v792_v13 = vld [vmem:[%s1098_s3 + $0x48] sm:$0xff]   ;;  %vm158_vm0 = vcmask 1041408   ;;  %vm154_vm1 = vcmask 818176  }
  0x2a   :  { %695 = vmatpush3.bf16.msra.mxu1 %v791_v11  ;;  %v793_v14 = vld [vmem:[%s1098_s3 + $0x8] sm:$0xff]   ;;  %v794_v15 = vld [vmem:[%s1098_s3 + $0x50] sm:$0xff]   ;;  %v658_v18 = vcombine.low %v76_v12, %v76_v12  ;;  %v796_v20 = vld [vmem:[%s1098_s3 + $0x58] sm:$0xff]   ;;  %v659_v23 = vcombine.high %v76_v12, %v76_v12  ;;  %v883_v37 = vmov 0.0   ;;  %v80_v43 = vshrl.u32 %v79_v42, 7 }
  0x2b   :  { %168 = vmatpush1.bf16.msra.mxu0 %v775_v4  ;;  %696 = vmatprep.subr.bf16.mxu1 %v792_v13  ;;  %v785_v17 = vld [vmem:[#allocation4 + $0x54] ss:$8 sps:$4 sm:$0xff]   ;;  %v795_v19 = vld [vmem:[%s1098_s3 + $0x10] sm:$0xff]   ;;  %v787_v21 = vld [vmem:[#allocation4 + $0x50] ss:$8 sps:$4 sm:$0xff]   ;;  %vm884_vm2 = vmmov 0  }
  0x2c   :  { %169 = vmatprep.subr.bf16.mxu0 %v776_v5  ;;  %v797_v22 = vld [vmem:[%s1098_s3 + $0x18] sm:$0xff]   ;;  %v160_v24 = vsel %vm158_vm0, %v658_v18, 0  ;;  %v798_v25 = vld [vmem:[%s1098_s3 + $0x60] sm:$0xff]   ;;  %v62_v27 = vld [vmem:[#allocation2 + $0x8] sm:$0xff]  ;;  %v81_v44 = vsub.s32 0, %v80_v43  ;;  %v85_v46 = vsub.s32 1, %v80_v43 }
  0x2d   :  { %v61_v26 = vld [vmem:[#allocation2] sm:$0xff]  ;;  %v800_v29 = vld [vmem:[%s1098_s3 + $0x68] sm:$0xff]   ;;  %v802_v32 = vld [vmem:[%s1098_s3 + $0x70] sm:$0xff]   ;;  %vm547_vm3 = vcmask 523264   ;;  %vm601_vm5 = vcmask 64512  }
  0x2e   :  { %697 = vmatpush3.bf16.msra.mxu1 %v793_v14  ;;  %v799_v28 = vld [vmem:[%s1098_s3 + $0x20] sm:$0xff]   ;;  %v63_v30 = vpack.c.bf16 %v62_v27, %v61_v26  ;;  %v801_v31 = vld [vmem:[%s1098_s3 + $0x28] sm:$0xff]   ;;  %v803_v33 = vld [vmem:[%s1098_s3 + $0x30] sm:$0xff]  }
  0x2f   :  { %170 = vmatpush1.bf16.msra.mxu0 %v778_v6  ;;  %698 = vmatprep.subr.bf16.mxu1 %v794_v15  ;;  %v804_v34 = vld [vmem:[%s1098_s3 + $0x78] sm:$0xff]   ;;  %v806_v36 = vld [vmem:[%s1100_s5] sm:$0xff]   ;;  %v807_v38 = vld [vmem:[%s1100_s5 + $0x8] sm:$0xff]  }
  0x30   :  { %171 = vmatprep.subr.bf16.mxu0 %v779_v7  ;;  %v805_v35 = vld [vmem:[%s1098_s3 + $0x38] sm:$0xff]   ;;  %v808_v39 = vld [vmem:[%s1100_s5 + $0x10] sm:$0xff]   ;;  %v810_v41 = vld [vmem:[%s1100_s5 + $0x20] sm:$0xff]  }
  0x31   :  { %v809_v40 = vld [vmem:[%s1100_s5 + $0x18] sm:$0xff]   ;;  %v77_v45 = vld [vmem:[%s1097_s2] sm:$0x3]  ;;  %v811_v63 = vld [vmem:[%s1100_s5 + $0x28] sm:$0xff]  }
  0x32   :  { %699 = vmatpush3.bf16.msra.mxu1 %v795_v19  ;;  %v82_v47 = vrot.slane %v77_v45, %v81_v44  ;;  %v86_v48 = vrot.slane %v77_v45, %v85_v46  ;;  %v812_v0 = vld [vmem:[%s1100_s5 + $0x30] sm:$0xff]   ;;  %v813_v1 = vld [vmem:[%s1100_s5 + $0x38] sm:$0xff]   ;;  %v814_v2 = vld [vmem:[%s1102_s7] sm:$0xff]  }
  0x33   :  { %172 = vmatpush1.bf16.msra.mxu0 %v781_v8  ;;  %700 = vmatprep.subr.bf16.mxu1 %v796_v20  ;;  %v815_v3 = vld [vmem:[%s1102_s7 + $0x8] sm:$0xff]   ;;  %v662_v5 = vld [vmem:[%s1099_s4] ss:$0 sm:$0xff] }
  0x34   :  { %173 = vmatprep.subr.bf16.mxu0 %v782_v10  ;;  %v679_v18 = vld [vmem:[%s1101_s6] ss:$0 sm:$0xff] }
  0x36   :  { %701 = vmatpush3.bf16.msra.mxu1 %v797_v22 }
  0x37   :  { %174 = vmatpush1.bf16.msra.mxu0 %v784_v16  ;;  %702 = vmatprep.subr.bf16.mxu1 %v798_v25  ;;  %v816_v16 = vld [vmem:[%s1102_s7 + $0x10] sm:$0xff]  }
  0x38   :  { %175 = vmatprep.subr.bf16.mxu0 %v785_v17  ;;  %v817_v17 = vld [vmem:[%s1102_s7 + $0x18] sm:$0xff]  }
  0x3a   :  { %703 = vmatpush3.bf16.msra.mxu1 %v799_v28  ;;  %v593_v28 = vand.u32 127, %v79_v42 }
  0x3b   :  { %176 = vmatpush1.bf16.msra.mxu0 %v787_v21  ;;  %704 = vmatprep.subr.bf16.mxu1 %v800_v29  ;;  %v688_v29 = vld [vmem:[%s1103_s8] ss:$0 sm:$0xff] }
  0x3c   :  { %660 = vmatprep.subr.msk.bf16.mxu0 %vm158_vm0, %v659_v23  ;;  %vm594_vm4 = vcmp.lt.s32.totalorder %v593_v28, 5  ;;  %vm595_vm6 = vcmp.eq.s32.totalorder %v593_v28, 7 }
  0x3e   :  { %705 = vmatpush3.bf16.msra.mxu1 %v801_v31 }
  0x3f   :  { %178 = vmatpush1.bf16.msra.mxu0 %v160_v24  ;;  %706 = vmatprep.subr.bf16.mxu1 %v802_v32 }
  0x40   :  { %730 = vmatprep.subr.bf16.mxu0 %v883_v37 }
  0x42   :  { %661 = vmatmul.mubr.msk.bf16.vlgmr.msra.gmra.mrb[0].mxu0 %vm154_vm1, %v63_v30  ;;  %707 = vmatpush3.bf16.msra.mxu1 %v803_v33 }
  0x43   :  { %708 = vmatprep.subr.bf16.mxu1 %v804_v34  ;;  %731 = vmatpush3.bf16.msra.mxu0 %v806_v36 }
  0x44   :  { %732 = vmatprep.subr.bf16.mxu0 %v883_v37  ;;  %746 = vmatprep.mubr.msk.bf16.mxu0 %vm884_vm2, %v883_v37 }
  0x46   :  { %709 = vmatpush3.bf16.msra.mxu1 %v805_v35 }
  0x47   :  { %750 = vmatprep.subr.bf16.mxu1 %v883_v37  ;;  %733 = vmatpush3.bf16.msra.mxu0 %v807_v38 }
  0x48   :  { %734 = vmatprep.subr.bf16.mxu0 %v883_v37 }
  0x4b   :  { %735 = vmatpush3.bf16.msra.mxu0 %v808_v39 }
  0x4c   :  { %736 = vmatprep.subr.bf16.mxu0 %v883_v37 }
  0x4f   :  { %737 = vmatpush3.bf16.msra.mxu0 %v809_v40 }
  0x50   :  { %738 = vmatprep.subr.bf16.mxu0 %v883_v37 }
  0x53   :  { %739 = vmatpush3.bf16.msra.mxu0 %v810_v41 }
  0x54   :  { %740 = vmatprep.subr.bf16.mxu0 %v883_v37 }
  0x57   :  { %741 = vmatpush3.bf16.msra.mxu0 %v811_v63 }
  0x58   :  { %742 = vmatprep.subr.bf16.mxu0 %v883_v37 }
  0x5b   :  { %743 = vmatpush3.bf16.msra.mxu0 %v812_v0 }
  0x5c   :  { %744 = vmatprep.subr.bf16.mxu0 %v883_v37 }
  0x5f   :  { %745 = vmatpush3.bf16.msra.mxu0 %v813_v1 }
 0x115   :  { %v199_v49 = vpop.f32.mrb[0].mxu0 }
 0x116   :  { %v200_v50 = vadd.f32 %v199_v49, %v82_v47  ;;  %v201_v51 = vpop.f32.mrb[1].mxu0 }
 0x117   :  { %v202_v52 = vadd.f32 %v201_v51, %v86_v48  ;;  %v203_v53 = vpop.f32.mrb[2].mxu0 }
 0x118   :  { %v204_v54 = vadd.f32 %v203_v53, %v82_v47  ;;  %v205_v55 = vpop.f32.mrb[3].mxu0  ;;  %v208_v57 = vmax.f32 %v200_v50, 0.0 }
 0x119   :  { %v206_v56 = vadd.f32 %v205_v55, %v86_v48  ;;  %v209_v59 = vmax.f32 %v202_v52, 0.0 }
 0x11a   :  { %v210_v58 = vmax.f32 %v204_v54, 0.0 }
 0x11b   :  { %v211_v60 = vmax.f32 %v206_v56, 0.0 }
 0x11c   :  { %v212_v61 = vpack.c.bf16 %v210_v58, %v208_v57 }
 0x11d   :  { %v213_v62 = vpack.c.bf16 %v211_v60, %v209_v59 }
 0x11f   :  { %381 = vmatprep.mubr.bf16.mxu1 %v213_v62 }
 0x120   :  { %382 = vmatmul.mubr.bf16.vlgmr.msra.gmra.mrb[0].mxu1 %v212_v61  ;;  %v885_v61 = vmov 1.0  }
 0x121   :  { %758 = vmatprep.mubr.msk.bf16.mxu1 %vm884_vm2, %v883_v37  ;;  %751 = vmatpush3.bf16.msra.mxu1 %v814_v2  ;;  %v596_v62 = vsel %vm595_vm6, 3600.0, %v885_v61 }
 0x122   :  { %752 = vmatprep.subr.bf16.mxu1 %v883_v37 }
 0x125   :  { %753 = vmatpush3.bf16.msra.mxu1 %v815_v3 }
 0x126   :  { %754 = vmatprep.subr.bf16.mxu1 %v883_v37 }
 0x129   :  { %755 = vmatpush3.bf16.msra.mxu1 %v816_v16 }
 0x12a   :  { %756 = vmatprep.subr.bf16.mxu1 %v883_v37 }
 0x12d   :  { %757 = vmatpush3.bf16.msra.mxu1 %v817_v17 }
 0x1f3   :  { %v710_v4 = vpop.f32.mrb[0].mxu1 }
 0x1f4   :  { %v711_v6 = vpop.f32.mrb[1].mxu1 }
 0x1f5   :  { %v712_v7 = vadd.f32 %v711_v6, %v710_v4  ;;  %v713_v8 = vpop.f32.mrb[2].mxu1 }
 0x1f6   :  { %v714_v9 = vpop.f32.mrb[3].mxu1 }
 0x1f7   :  { %v384_v10 = vadd.f32 %v712_v7, %v662_v5  ;;  %v715_v11 = vadd.f32 %v714_v9, %v713_v8 }
 0x1f9   :  { %v387_v12 = vadd.f32 %v715_v11, %v662_v5  ;;  %v390_v13 = vmax.f32 %v384_v10, 0.0 }
 0x1fb   :  { %v391_v14 = vmax.f32 %v387_v12, 0.0 }
 0x1fd   :  { %v392_v15 = vpack.c.bf16 %v391_v14, %v390_v13 }
 0x1ff   :  { %747 = vmatmul.mubr.bf16.vlgmr.msra.gmra.mrb[4].mxu0 %v392_v15 }
 0x2d2   :  { %v498_v19 = vpop.f32.mrb[4].mxu0 }
 0x2d3   :  { %v499_v20 = vadd.f32 %v679_v18, %v498_v19  ;;  %v748_v21 = vpop.f32.mrb[5].mxu0 }
 0x2d4   :  { %v501_v22 = vpop.f32.mrb[6].mxu0 }
 0x2d5   :  { %v502_v23 = vadd.f32 %v679_v18, %v501_v22  ;;  %v749_v24 = vpop.f32.mrb[7].mxu0  ;;  %v505_v25 = vmax.f32 %v499_v20, 0.0 }
 0x2d7   :  { %v506_v26 = vmax.f32 %v502_v23, 0.0 }
 0x2d9   :  { %v507_v27 = vpack.c.bf16 %v506_v26, %v505_v25 }
 0x2db   :  { %759 = vmatmul.mubr.msk.bf16.vlgmr.msra.gmra.mrb[4].mxu1 %vm547_vm3, %v507_v27 }
 0x3ae   :  { %v585_v30 = vpop.f32.mrb[4].mxu1 }
 0x3af   :  { %v586_v31 = vadd.f32 %v688_v29, %v585_v30  ;;  %v760_v32 = vpop.f32.mrb[5].mxu1 }
 0x3b0   :  { %v588_v33 = vpop.f32.mrb[6].mxu1 }
 0x3b1   :  { %v589_v34 = vadd.f32 %v688_v29, %v588_v33  ;;  %v761_v35 = vpop.f32.mrb[7].mxu1  ;;  %v599_v36 = vsel %vm594_vm4, %v586_v31, -inf  ;;  %v610_v41 = vsub.f32 0.0, %v586_v31 }
 0x3b2   :  { %v602_v37 = vsel %vm601_vm5, %v599_v36, -inf }
 0x3b3   :  { %603 = vmax.xlane.f32.xlu0 %v602_v37  ;;  %v600_v38 = vsel %vm594_vm4, %v589_v34, -inf  ;;  %v611_v46 = vsub.f32 0.0, %v589_v34 }
 0x3b4   :  { %v605_v39 = vsel %vm601_vm5, %v600_v38, -inf }
 0x3b7   :  { %606 = vmax.xlane.f32.xlu0 %v605_v39 }
 0x440   :  { %v604_v40 = vpop.xlane.xlu0 %603 }
 0x441   :  { %v608_v42 = vsub.f32 %v586_v31, %v604_v40 }
 0x443   :  { %v612_v43 = vsel %vm594_vm4, %v608_v42, %v610_v41 }
 0x444   :  { %v614_v44 = vmul.f32 1.442695, %v612_v43  ;;  %v607_v45 = vpop.xlane.xlu0 %606 }
 0x445   :  { %v609_v47 = vsub.f32 %v589_v34, %v607_v45 }
 0x446   :  { %818 = vpow2.f32 %v614_v44 }
 0x447   :  { %v613_v48 = vsel %vm594_vm4, %v609_v47, %v611_v46 }
 0x448   :  { %v616_v49 = vmul.f32 1.442695, %v613_v48 }
 0x44a   :  { %820 = vpow2.f32 %v616_v49 }
 0x450   :  { %v819_v50 = vpop.eup %818 }
 0x451   :  { %v618_v51 = vsel %vm594_vm4, %v819_v50, 0.0  ;;  %v630_v56 = vadd.f32 1.0, %v819_v50 }
 0x452   :  { %v620_v52 = vsel %vm601_vm5, %v618_v51, 0.0 }
 0x453   :  { %621 = vadd.xlane.f32.xlu1 %v620_v52 }
 0x454   :  { %v821_v53 = vpop.eup %820 }
 0x455   :  { %v619_v54 = vsel %vm594_vm4, %v821_v53, 0.0  ;;  %v631_v58 = vadd.f32 1.0, %v821_v53 }
 0x456   :  { %v623_v55 = vsel %vm601_vm5, %v619_v54, 0.0 }
 0x457   :  { %624 = vadd.xlane.f32.xlu1 %v623_v55 }
 0x4e0   :  { %v622_v57 = vpop.xlane.xlu1 %621 }
 0x4e1   :  { %822 = vrcp.f32 %v622_v57 }
 0x4e2   :  { %824 = vrcp.f32 %v630_v56 }
 0x4e4   :  { %v625_v59 = vpop.xlane.xlu1 %624 }
 0x4e5   :  { %826 = vrcp.f32 %v625_v59 }
 0x4e6   :  { %828 = vrcp.f32 %v631_v58 }
 0x4eb   :  { %v823_v60 = vpop.eup %822 }
 0x4ec   :  { %v628_v63 = vmul.f32 %v823_v60, %v819_v50  ;;  %v825_v0 = vpop.eup %824 }
 0x4ee   :  { %v634_v1 = vsel %vm594_vm4, %v628_v63, %v825_v0 }
 0x4ef   :  { %v827_v2 = vpop.eup %826  ;;  %v636_v3 = vmul.f32 %v634_v1, %v596_v62 }
 0x4f0   :  { %v629_v4 = vmul.f32 %v827_v2, %v821_v53  ;;  %v829_v5 = vpop.eup %828 }
 0x4f1   :  { %638 = vst.msk [vmem:[%s1104_s9] sm:$0xff] %vm601_vm5, %v636_v3 }
 0x4f2   :  { %v635_v6 = vsel %vm594_vm4, %v629_v4, %v829_v5 }
 0x4f3   :  { %v637_v7 = vmul.f32 %v635_v6, %v596_v62 }
 0x4f5   :  { %639 = vst.msk [vmem:[%s1104_s9 + $0x8] sm:$0xff] %vm601_vm5, %v637_v7 }
 0x4f6   :  { %644 = vsyncpa [#allocation3], 1 }
 0x4f7   :  { %645 = vsyncpa [#allocation5], 1 }

</bundles_post_ra>
